<compile_context>
chip_gen: v7x
topology: tpu7x:2x2x1
jax: 0.10.0
libtpu: 0.0.40
codegen_flags: <defaults>
</compile_context>

<pallas_src>
import functools

import jax
import jax.numpy as jnp
from jax import lax
from jax.experimental import pallas as pl
from jax.experimental.pallas import tpu as pltpu


def _soft_search_kernel(cand_ref, beh_ref, out_ref, sim_ref, *, k, k_pad):
    """One block of TB batch rows per grid step.

    cand_ref: (TB, D)        candidate embeddings
    beh_ref : (TB, S, D)     user behavior sequences
    out_ref : (TB, k_pad)    int32 top-k indices (columns >= k are padding)
    sim_ref : (TB, S) f32    VMEM scratch holding lane-dense similarities
    """
    tb, s, d = beh_ref.shape
    eps2 = jnp.float32(1e-16)  # eps**2 with eps = 1e-8 (F.cosine_similarity default)

    # ---- Phase 1: per-row cosine similarity (MXU dot, EUP rsqrt) ----------
    # Each row r: normalize its behavior sequence (lane-reduce w/ keepdims, no
    # relayout), then a (1, D) x (S, D)^T MXU matmul producing a lane-dense
    # (1, S) row written into the (TB, S) scratch. The candidate norm is a
    # positive per-row scalar and does not affect the ranking, so it is dropped.
    def compute_row(r, carry):
        beh_r = beh_ref[r].astype(jnp.float32)                        # (S, D)
        sq = jnp.sum(beh_r * beh_r, axis=-1, keepdims=True)           # (S, 1)
        beh_rn = beh_r * lax.rsqrt(jnp.maximum(sq, eps2))             # (S, D)
        cand_r = cand_ref[pl.ds(r, 1), :].astype(jnp.float32)         # (1, D)
        row = lax.dot_general(
            cand_r, beh_rn,
            dimension_numbers=(((1,), (1,)), ((), ())),
            preferred_element_type=jnp.float32)                       # (1, S)
        sim_ref[pl.ds(r, 1), :] = row
        return carry

    lax.fori_loop(0, tb, compute_row, 0, unroll=min(8, tb))

    # ---- Phase 2: iterative top-k (argmax + mask) on the dense (TB, S) sim --
    sim0 = sim_ref[...]                                               # (TB, S)
    iota_s = lax.broadcasted_iota(jnp.int32, (tb, s), 1)
    col_iota = lax.broadcasted_iota(jnp.int32, (tb, k_pad), 1)
    neg_inf = jnp.float32(-jnp.inf)
    sentinel = jnp.int32(s)

    def select_next(j, carry):
        sim_c, out_c = carry
        m = jnp.max(sim_c, axis=-1, keepdims=True)                    # (TB, 1)
        # first occurrence of the max (matches torch.topk / lax.top_k ties)
        idx = jnp.min(jnp.where(sim_c == m, iota_s, sentinel),
                      axis=-1, keepdims=True)                         # (TB, 1)
        out_c = jnp.where(col_iota == j, idx, out_c)                  # insert col j
        sim_c = jnp.where(iota_s == idx, neg_inf, sim_c)              # mask winner
        return sim_c, out_c

    out0 = jnp.zeros((tb, k_pad), jnp.int32)
    _, out = lax.fori_loop(0, k, select_next, (sim0, out0), unroll=min(8, k))
    out_ref[...] = out                                                # lane-dense store


def _pick_tb(b, s, d, budget_bytes=16 << 20, cap=64):
    """Rows per grid step: fill sublanes / amortize ~0.35us step overhead while
    keeping the double-buffered blocks well inside v7x's 64 MiB VMEM."""
    row_bytes = 4 * (s * d + d + 2 * s + 128)
    tb = max(1, budget_bytes // (2 * row_bytes))
    tb = int(min(tb, cap, b))
    if tb == b:
        return b
    return max(8, (tb // 8) * 8)  # keep sublane dim a multiple of 8


def soft_search(candidate_emb: jax.Array, user_behavior_embs: jax.Array,
                k: int = 100) -> jax.Array:
    """Pallas equivalent of SoftSearch.forward (indices are int32, not int64)."""
    B, D = candidate_emb.shape
    Bb, S, Dd = user_behavior_embs.shape
    assert B == Bb and D == Dd
    assert 0 < k <= S, "k must be in (0, seq_len]"

    tb = _pick_tb(B, S, D)
    k_pad = ((k + 127) // 128) * 128          # 128-padded, lane-dense output slab

    # Explicit VMEM budget (double-buffered blocks + scratch + headroom),
    # clamped so it is safe on v5e/v6e (128 MiB) and v7x (64 MiB physical).
    block_bytes = 4 * tb * (S * D + D + k_pad)
    scratch_bytes = 4 * max(tb, 8) * max(((S + 127) // 128) * 128, 128)
    vmem_limit = int(min(max(2 * block_bytes + scratch_bytes + (4 << 20),
                             32 << 20), 56 << 20))

    kernel = functools.partial(_soft_search_kernel, k=k, k_pad=k_pad)
    out = pl.pallas_call(
        kernel,
        out_shape=jax.ShapeDtypeStruct((B, k_pad), jnp.int32),
        grid=(pl.cdiv(B, tb),),
        in_specs=[
            pl.BlockSpec((tb, D), lambda i: (i, 0)),          # candidate rows
            pl.BlockSpec((tb, S, D), lambda i: (i, 0, 0)),    # behavior sequences
        ],
        out_specs=pl.BlockSpec((tb, k_pad), lambda i: (i, 0)),
        scratch_shapes=[pltpu.VMEM((tb, S), jnp.float32)],
        compiler_params=pltpu.CompilerParams(
            dimension_semantics=("parallel",),   # batch rows are independent
            vmem_limit_bytes=vmem_limit,
        ),
    )(candidate_emb, user_behavior_embs)
    return out[:, :k]


if __name__ == "__main__":
    key = jax.random.PRNGKey(0)
    B, S, D, K = 2, 8, 32, 4  # small shapes consistent with the module

    k1, k2 = jax.random.split(key)
    candidate_emb = jax.random.normal(k1, (B, D), dtype=jnp.float32)
    user_behavior_embs = jax.random.normal(k2, (B, S, D), dtype=jnp.float32)

    topk_idx = soft_search(candidate_emb, user_behavior_embs, k=K)
    topk_idx = jax.block_until_ready(topk_idx)

    # Reference check in plain JAX (same semantics as F.cosine_similarity + topk).
    cn = candidate_emb / jnp.maximum(
        jnp.linalg.norm(candidate_emb, axis=-1, keepdims=True), 1e-8)
    bn = user_behavior_embs / jnp.maximum(
        jnp.linalg.norm(user_behavior_embs, axis=-1, keepdims=True), 1e-8)
    sim_ref = jnp.einsum("bd,bsd->bs", cn, bn)
    _, ref_idx = jax.lax.top_k(sim_ref, K)
    assert topk_idx.shape == (B, K)
    assert bool((topk_idx == ref_idx.astype(jnp.int32)).all())

    print("KERNEL_OK")
</pallas_src>

<mosaic_0001>
module attributes {stable_mosaic.version = 11 : i64} {
  func.func @_soft_search_kernel(%arg0: i32, %arg1: memref<2x32xf32, #tpu.memory_space<vmem>>, %arg2: memref<2x8x32xf32, #tpu.memory_space<vmem>>, %arg3: memref<2x128xi32, #tpu.memory_space<vmem>>, %arg4: memref<2x8xf32, #tpu.memory_space<vmem>>) attributes {dimension_semantics = [#tpu.dimension_semantics<parallel>], iteration_bounds = array<i64: 1>, scalar_prefetch = 0 : i64, scratch_operands = 1 : i64, tpu.core_type = #tpu.core_type<tc>, window_params = [{transform_indices = @transform_0, window_bounds = array<i64: 2, 32>}, {transform_indices = @transform_1, window_bounds = array<i64: 2, 8, 32>}, {transform_indices = @transform_2, window_bounds = array<i64: 2, 128>}]} {
    %cst = arith.constant 1.000000e-16 : f32
    %c0_i32 = arith.constant 0 : i32
    %0 = arith.index_cast %c0_i32 : i32 to index
    %c0 = arith.constant 0 : index
    %c0_0 = arith.constant 0 : index
    %1 = vector.load %arg2[%0, %c0, %c0_0] : memref<2x8x32xf32, #tpu.memory_space<vmem>>, vector<1x8x32xf32>
    %2 = vector.shape_cast %1 : vector<1x8x32xf32> to vector<8x32xf32>
    %3 = arith.mulf %2, %2 : vector<8x32xf32>
    %cst_1 = arith.constant dense<0.000000e+00> : vector<8xf32>
    %4 = vector.multi_reduction <add>, %3, %cst_1 [1] : vector<8x32xf32> to vector<8xf32>
    %5 = vector.shape_cast %4 : vector<8xf32> to vector<8x1xf32>
    %6 = vector.broadcast %cst : f32 to vector<8x1xf32>
    %7 = arith.maximumf %5, %6 : vector<8x1xf32>
    %8 = math.rsqrt %7 : vector<8x1xf32>
    %9 = vector.broadcast %8 : vector<8x1xf32> to vector<8x32xf32>
    %10 = arith.mulf %2, %9 : vector<8x32xf32>
    %11 = arith.index_cast %c0_i32 : i32 to index
    %c0_2 = arith.constant 0 : index
    %12 = vector.load %arg1[%11, %c0_2] : memref<2x32xf32, #tpu.memory_space<vmem>>, vector<1x32xf32>
    %cst_3 = arith.constant dense<0.000000e+00> : vector<1x8xf32>
    %13 = tpu.matmul %12, %10, %cst_3 {dimension_numbers = #tpu.dot_dimension_numbers<[1], [1], [0], [0], [0, 0, 1, 0], [], []>} : vector<1x32xf32>, vector<8x32xf32>, vector<1x8xf32> -> vector<1x8xf32>
    %14 = arith.index_cast %c0_i32 : i32 to index
    %c0_4 = arith.constant 0 : index
    %15 = vector.load %arg4[%14, %c0_4] : memref<2x8xf32, #tpu.memory_space<vmem>>, vector<1x8xf32>
    tpu.vector_store %arg4[%14, %c0_4], %13 {strides = array<i32>} : memref<2x8xf32, #tpu.memory_space<vmem>>, vector<1x8xf32>,
    %c1_i32 = arith.constant 1 : i32
    %16 = arith.index_cast %c1_i32 : i32 to index
    %c0_5 = arith.constant 0 : index
    %c0_6 = arith.constant 0 : index
    %17 = vector.load %arg2[%16, %c0_5, %c0_6] : memref<2x8x32xf32, #tpu.memory_space<vmem>>, vector<1x8x32xf32>
    %18 = vector.shape_cast %17 : vector<1x8x32xf32> to vector<8x32xf32>
    %19 = arith.mulf %18, %18 : vector<8x32xf32>
    %cst_7 = arith.constant dense<0.000000e+00> : vector<8xf32>
    %20 = vector.multi_reduction <add>, %19, %cst_7 [1] : vector<8x32xf32> to vector<8xf32>
    %21 = vector.shape_cast %20 : vector<8xf32> to vector<8x1xf32>
    %22 = vector.broadcast %cst : f32 to vector<8x1xf32>
    %23 = arith.maximumf %21, %22 : vector<8x1xf32>
    %24 = math.rsqrt %23 : vector<8x1xf32>
    %25 = vector.broadcast %24 : vector<8x1xf32> to vector<8x32xf32>
    %26 = arith.mulf %18, %25 : vector<8x32xf32>
    %27 = arith.index_cast %c1_i32 : i32 to index
    %c0_8 = arith.constant 0 : index
    %28 = vector.load %arg1[%27, %c0_8] : memref<2x32xf32, #tpu.memory_space<vmem>>, vector<1x32xf32>
    %cst_9 = arith.constant dense<0.000000e+00> : vector<1x8xf32>
    %29 = tpu.matmul %28, %26, %cst_9 {dimension_numbers = #tpu.dot_dimension_numbers<[1], [1], [0], [0], [0, 0, 1, 0], [], []>} : vector<1x32xf32>, vector<8x32xf32>, vector<1x8xf32> -> vector<1x8xf32>
    %30 = arith.index_cast %c1_i32 : i32 to index
    %c0_10 = arith.constant 0 : index
    %31 = vector.load %arg4[%30, %c0_10] : memref<2x8xf32, #tpu.memory_space<vmem>>, vector<1x8xf32>
    tpu.vector_store %arg4[%30, %c0_10], %29 {strides = array<i32>} : memref<2x8xf32, #tpu.memory_space<vmem>>, vector<1x8xf32>,
    %c2_i32 = arith.constant 2 : i32
    %c0_11 = arith.constant 0 : index
    %c0_12 = arith.constant 0 : index
    %32 = vector.load %arg4[%c0_11, %c0_12] : memref<2x8xf32, #tpu.memory_space<vmem>>, vector<2x8xf32>
    %33 = tpu.iota {dimensions = array<i32: 1>} : vector<2x8xi32>
    %34 = tpu.iota {dimensions = array<i32: 1>} : vector<2x128xi32>
    %c0_i32_13 = arith.constant 0 : i32
    %35 = vector.broadcast %c0_i32_13 : i32 to vector<2x128xi32>
    %c8_i32 = arith.constant 8 : i32
    %cst_14 = arith.constant 0xFF800000 : f32
    %c0_i32_15 = arith.constant 0 : i32
    %cst_16 = arith.constant dense<0xFF800000> : vector<2xf32>
    %36 = vector.multi_reduction <maximumf>, %32, %cst_16 [1] : vector<2x8xf32> to vector<2xf32>
    %37 = vector.shape_cast %36 : vector<2xf32> to vector<2x1xf32>
    %38 = vector.broadcast %37 : vector<2x1xf32> to vector<2x8xf32>
    %39 = arith.cmpf oeq, %32, %38 : vector<2x8xf32>
    %40 = vector.broadcast %c8_i32 : i32 to vector<2x8xi32>
    %41 = arith.select %39, %33, %40 : vector<2x8xi1>, vector<2x8xi32>
    %cst_17 = arith.constant dense<2147483647> : vector<2xi32>
    %42 = vector.multi_reduction <minsi>, %41, %cst_17 [1] : vector<2x8xi32> to vector<2xi32>
    %43 = vector.shape_cast %42 : vector<2xi32> to vector<2x1xi32>
    %44 = vector.broadcast %c0_i32_15 : i32 to vector<2x128xi32>
    %45 = arith.cmpi eq, %34, %44 : vector<2x128xi32>
    %46 = vector.shape_cast %43 : vector<2x1xi32> to vector<2x1xi32>
    %47 = vector.broadcast %46 : vector<2x1xi32> to vector<2x128xi32>
    %48 = arith.select %45, %47, %35 : vector<2x128xi1>, vector<2x128xi32>
    %49 = vector.broadcast %43 : vector<2x1xi32> to vector<2x8xi32>
    %50 = arith.cmpi eq, %33, %49 : vector<2x8xi32>
    %51 = vector.broadcast %cst_14 : f32 to vector<2x8xf32>
    %52 = arith.select %50, %51, %32 : vector<2x8xi1>, vector<2x8xf32>
    %c1_i32_18 = arith.constant 1 : i32
    %cst_19 = arith.constant dense<0xFF800000> : vector<2xf32>
    %53 = vector.multi_reduction <maximumf>, %52, %cst_19 [1] : vector<2x8xf32> to vector<2xf32>
    %54 = vector.shape_cast %53 : vector<2xf32> to vector<2x1xf32>
    %55 = vector.broadcast %54 : vector<2x1xf32> to vector<2x8xf32>
    %56 = arith.cmpf oeq, %52, %55 : vector<2x8xf32>
    %57 = vector.broadcast %c8_i32 : i32 to vector<2x8xi32>
    %58 = arith.select %56, %33, %57 : vector<2x8xi1>, vector<2x8xi32>
    %cst_20 = arith.constant dense<2147483647> : vector<2xi32>
    %59 = vector.multi_reduction <minsi>, %58, %cst_20 [1] : vector<2x8xi32> to vector<2xi32>
    %60 = vector.shape_cast %59 : vector<2xi32> to vector<2x1xi32>
    %61 = vector.broadcast %c1_i32_18 : i32 to vector<2x128xi32>
    %62 = arith.cmpi eq, %34, %61 : vector<2x128xi32>
    %63 = vector.shape_cast %60 : vector<2x1xi32> to vector<2x1xi32>
    %64 = vector.broadcast %63 : vector<2x1xi32> to vector<2x128xi32>
    %65 = arith.select %62, %64, %48 : vector<2x128xi1>, vector<2x128xi32>
    %66 = vector.broadcast %60 : vector<2x1xi32> to vector<2x8xi32>
    %67 = arith.cmpi eq, %33, %66 : vector<2x8xi32>
    %68 = vector.broadcast %cst_14 : f32 to vector<2x8xf32>
    %69 = arith.select %67, %68, %52 : vector<2x8xi1>, vector<2x8xf32>
    %c2_i32_21 = arith.constant 2 : i32
    %cst_22 = arith.constant dense<0xFF800000> : vector<2xf32>
    %70 = vector.multi_reduction <maximumf>, %69, %cst_22 [1] : vector<2x8xf32> to vector<2xf32>
    %71 = vector.shape_cast %70 : vector<2xf32> to vector<2x1xf32>
    %72 = vector.broadcast %71 : vector<2x1xf32> to vector<2x8xf32>
    %73 = arith.cmpf oeq, %69, %72 : vector<2x8xf32>
    %74 = vector.broadcast %c8_i32 : i32 to vector<2x8xi32>
    %75 = arith.select %73, %33, %74 : vector<2x8xi1>, vector<2x8xi32>
    %cst_23 = arith.constant dense<2147483647> : vector<2xi32>
    %76 = vector.multi_reduction <minsi>, %75, %cst_23 [1] : vector<2x8xi32> to vector<2xi32>
    %77 = vector.shape_cast %76 : vector<2xi32> to vector<2x1xi32>
    %78 = vector.broadcast %c2_i32_21 : i32 to vector<2x128xi32>
    %79 = arith.cmpi eq, %34, %78 : vector<2x128xi32>
    %80 = vector.shape_cast %77 : vector<2x1xi32> to vector<2x1xi32>
    %81 = vector.broadcast %80 : vector<2x1xi32> to vector<2x128xi32>
    %82 = arith.select %79, %81, %65 : vector<2x128xi1>, vector<2x128xi32>
    %83 = vector.broadcast %77 : vector<2x1xi32> to vector<2x8xi32>
    %84 = arith.cmpi eq, %33, %83 : vector<2x8xi32>
    %85 = vector.broadcast %cst_14 : f32 to vector<2x8xf32>
    %86 = arith.select %84, %85, %69 : vector<2x8xi1>, vector<2x8xf32>
    %c3_i32 = arith.constant 3 : i32
    %cst_24 = arith.constant dense<0xFF800000> : vector<2xf32>
    %87 = vector.multi_reduction <maximumf>, %86, %cst_24 [1] : vector<2x8xf32> to vector<2xf32>
    %88 = vector.shape_cast %87 : vector<2xf32> to vector<2x1xf32>
    %89 = vector.broadcast %88 : vector<2x1xf32> to vector<2x8xf32>
    %90 = arith.cmpf oeq, %86, %89 : vector<2x8xf32>
    %91 = vector.broadcast %c8_i32 : i32 to vector<2x8xi32>
    %92 = arith.select %90, %33, %91 : vector<2x8xi1>, vector<2x8xi32>
    %cst_25 = arith.constant dense<2147483647> : vector<2xi32>
    %93 = vector.multi_reduction <minsi>, %92, %cst_25 [1] : vector<2x8xi32> to vector<2xi32>
    %94 = vector.shape_cast %93 : vector<2xi32> to vector<2x1xi32>
    %95 = vector.broadcast %c3_i32 : i32 to vector<2x128xi32>
    %96 = arith.cmpi eq, %34, %95 : vector<2x128xi32>
    %97 = vector.shape_cast %94 : vector<2x1xi32> to vector<2x1xi32>
    %98 = vector.broadcast %97 : vector<2x1xi32> to vector<2x128xi32>
    %99 = arith.select %96, %98, %82 : vector<2x128xi1>, vector<2x128xi32>
    %100 = vector.broadcast %94 : vector<2x1xi32> to vector<2x8xi32>
    %101 = arith.cmpi eq, %33, %100 : vector<2x8xi32>
    %102 = vector.broadcast %cst_14 : f32 to vector<2x8xf32>
    %103 = arith.select %101, %102, %86 : vector<2x8xi1>, vector<2x8xf32>
    %c4_i32 = arith.constant 4 : i32
    %c0_26 = arith.constant 0 : index
    %c0_27 = arith.constant 0 : index
    %104 = vector.load %arg3[%c0_26, %c0_27] : memref<2x128xi32, #tpu.memory_space<vmem>>, vector<2x128xi32>
    tpu.vector_store %arg3[%c0_26, %c0_27], %99 {strides = array<i32>} : memref<2x128xi32, #tpu.memory_space<vmem>>, vector<2x128xi32>,
    return
  }
  func.func @transform_0(%arg0: i32) -> (i32, i32) {
    %c0_i32 = arith.constant 0 : i32
    %c0_i32_0 = arith.constant 0 : i32
    return %arg0, %c0_i32 : i32, i32
  }
  func.func @transform_1(%arg0: i32) -> (i32, i32, i32) {
    %c0_i32 = arith.constant 0 : i32
    %c0_i32_0 = arith.constant 0 : i32
    %c0_i32_1 = arith.constant 0 : i32
    return %arg0, %c0_i32, %c0_i32_0 : i32, i32, i32
  }
  func.func @transform_2(%arg0: i32) -> (i32, i32) {
    %c0_i32 = arith.constant 0 : i32
    %c0_i32_0 = arith.constant 0 : i32
    return %arg0, %c0_i32 : i32, i32
  }
}

</mosaic_0001>

<bundles_post_ra>
// kernel: tpu_custom_call.1
= control target key start
LH: loop header
LB: loop body
LE: loop exit
PB: predicated region body
PF: predicated region fallthrough
CT: control target
= control target key end

     0   :  { %7 = vsyncpa [#allocation4], 0  ;;  %s521_s0 = inlined_call_operand.hbm [shape: f32[2,32], index: 0, kind: input, shape index: {}]   ;;  %s522_s1 = inlined_call_operand.hbm [shape: f32[2,8,32], index: 1, kind: input, shape index: {}]   ;;  %s523_s2 = inlined_call_operand.hbm [shape: s32[2,128], index: 2, kind: output, shape index: {}]  }
   0x1   :  { %8 = vsyncpa [#allocation7], 0 }
   0x2   :  { %9 = vsyncpa [#allocation5], 0  ;;  %s429_s9 = smov [#allocation3]   ;;  %s430_s11 = smov [#allocation6]  }
   0x3   :  { %s16_s10 = sshll.u32 %s429_s9, 4  ;;  %s25_s12 = sshll.u32 %s430_s11, 4  ;;  %s17_s10 = int_to_ptr.vmem [resolvable:$true] %s16_s10  ;;  %s451_s12 = int_to_ptr.vmem [resolvable:$true] %s25_s12 }
   0x4   :  { %s357_s15 = scalar_lea.hbm %s521_s0, 32 }
   0x5   :  { %p358_p0 = scmp.ne.s32.totalorder %s521_s0, %s357_s15  ;;  %p361_p1 = scmp.lt.u32.totalorder %s357_s15, %s521_s0 }
   0x7   :  { %p363_p2 = pnand %p361_p1, %p358_p0 }
   0x9   :  { %366 = shalt.err (!%p363_p2)
}
   0xa   :  { %s367_s20 = scalar_lea.vmem %s17_s10, 32  ;;  %p372_p4 = scmp.lt.s32.totalorder %s17_s10, %s17_s10 }
   0xb   :  { %p368_p3 = scmp.ne.s32.totalorder %s17_s10, %s367_s20  ;;  %p373_p5 = scmp.lt.s32.totalorder %s367_s20, %s367_s20 }
   0xd   :  { %p374_p6 = por %p373_p5, %p372_p4 }
   0xf   :  { %p375_p7 = pnand %p374_p6, %p368_p3 }
  0x11   :  { %378 = shalt.err (!%p375_p7)
}
  0x12   :  { %19 = dma.hbm_to_vmem [thread:$0]  %s521_s0, 32, %s17_s10, [#allocation4]  }
  0x13   :  { %s379_s25 = scalar_lea.hbm %s522_s1, 256 }
  0x14   :  { %p380_p8 = scmp.ne.s32.totalorder %s522_s1, %s379_s25  ;;  %p383_p9 = scmp.lt.u32.totalorder %s379_s25, %s522_s1 }
  0x16   :  { %p385_p10 = pnand %p383_p9, %p380_p8 }
  0x18   :  { %388 = shalt.err (!%p385_p10)
}
  0x19   :  { %s389_s30 = scalar_lea.vmem %s451_s12, 256  ;;  %p394_p12 = scmp.lt.s32.totalorder %s451_s12, %s451_s12 }
  0x1a   :  { %p390_p11 = scmp.ne.s32.totalorder %s451_s12, %s389_s30  ;;  %p395_p13 = scmp.lt.s32.totalorder %s389_s30, %s389_s30 }
  0x1c   :  { %p396_p0 = por %p395_p13, %p394_p12 }
  0x1e   :  { %p397_p1 = pnand %p396_p0, %p390_p11 }
  0x20   :  { %400 = shalt.err (!%p397_p1)
}
  0x21   :  { %s431_s0 = smov 128   ;;  %s432_s3 = smov 8  }
  0x22   :  { %31 = dma.hbm_to_vmem [thread:$0]  %s522_s1, 256, %s451_s12, [#allocation7], %s431_s0, %s431_s0, %s432_s3  }
  0x23   :  { %423 = dma.done.wait [#allocation4], 32  }
  0x24   :  { %424 = vsyncadd [#allocation4], 4294967264 }
  0x25   :  { %425 = dma.done.wait [#allocation7], 256  }
  0x26   :  { %426 = vsyncadd [#allocation7], 4294967040  ;;  %v38_v0 = vld [vmem:[#allocation6] sm:$0xff]  ;;  %vm40_vm0 = vcmask 261120   ;;  %v127_v1 = vld [vmem:[#allocation6 + $0x8] sm:$0xff]  ;;  %v433_v6 = vmov 0.0   ;;  %v214_v23 = vlaneseq }
  0x27   :  { %v39_v2 = vmul.f32 %v38_v0, %v38_v0  ;;  %v128_v3 = vmul.f32 %v127_v1, %v127_v1  ;;  %336 = vmatprep.subr.mxu0 %v433_v6  ;;  %341 = vmatprep.subr.mxu1 %v433_v6  ;;  %vm434_vm1 = vmmov 0   ;;  %v47_v13 = vld [vmem:[#allocation3] sm:$0x1]  ;;  %v135_v16 = vld [vmem:[#allocation3 + $0x1] sm:$0x1]  ;;  %vm124_vm2 = vcmask 57344  }
  0x28   :  { %338 = vmatprep.mubr.msk.f32.mxu0 %vm434_vm1, %v433_v6  ;;  %343 = vmatprep.mubr.msk.f32.mxu1 %vm434_vm1, %v433_v6  ;;  %vm216_vm3 = vcmask 58368   ;;  %v489_v24 = vand.u32 127, %v214_v23  ;;  %s435_s1 = smov [#allocation8]  }
  0x29   :  { %v41_v4 = vsel %vm40_vm0, %v39_v2, 0.0  ;;  %v129_v5 = vsel %vm40_vm0, %v128_v3, 0.0  ;;  %s318_s6 = sshll.u32 %s435_s1, 4  ;;  %s319_s6 = int_to_ptr.vmem [resolvable:$true] %s318_s6 }
  0x2a   :  { %42 = vadd.xlane.f32.xlu0 %v41_v4  ;;  %vm237_vm9 = vcmp.eq.s32.totalorder %v489_v24, 0  ;;  %vm261_vm10 = vcmp.eq.s32.totalorder %v489_v24, 1  ;;  %vm285_vm14 = vcmp.eq.s32.totalorder %v489_v24, 2  ;;  %s401_s7 = scalar_lea.vmem %s319_s6, 32  ;;  %p406_p3 = scmp.lt.s32.totalorder %s319_s6, %s319_s6 }
  0x2b   :  { %p402_p2 = scmp.ne.s32.totalorder %s319_s6, %s401_s7  ;;  %p407_p4 = scmp.lt.s32.totalorder %s401_s7, %s401_s7 }
  0x2d   :  { %p408_p5 = por %p407_p4, %p406_p3 }
  0x2e   :  { %130 = vadd.xlane.f32.xlu0 %v129_v5 }
  0x2f   :  { %p409_p6 = pnand %p408_p5, %p402_p2 }
  0xb7   :  { %v43_v7 = vpop.xlane.xlu0 %42 }
  0xb8   :  { %v44_v8 = vmax.f32 %v43_v7, 1e-16 }
  0xba   :  { %353 = vrsqrt.f32 %v44_v8 }
  0xbb   :  { %v131_v9 = vpop.xlane.xlu0 %130 }
  0xbc   :  { %v132_v10 = vmax.f32 %v131_v9, 1e-16 }
  0xbe   :  { %355 = vrsqrt.f32 %v132_v10 }
  0xc4   :  { %v354_v11 = vpop.eup %353 }
  0xc5   :  { %v46_v12 = vmul.f32 %v354_v11, %v38_v0 }
  0xc7   :  { %337 = vmatpush3.xpose.msk.msra.mxu0 %vm40_vm0, %v46_v12 }
  0xc8   :  { %v356_v14 = vpop.eup %355 }
  0xc9   :  { %v134_v15 = vmul.f32 %v356_v14, %v127_v1 }
  0xca   :  { %339 = vmatmul.mubr.msk.f32.vlgmr.msra.gmra.mrb[0].mxu0 %vm40_vm0, %v47_v13 }
  0xcb   :  { %342 = vmatpush3.xpose.msk.msra.mxu1 %vm40_vm0, %v134_v15 }
  0xce   :  { %344 = vmatmul.mubr.msk.f32.vlgmr.msra.gmra.mrb[0].mxu1 %vm40_vm0, %v135_v16 }
 0x19d   :  { %v120_v17 = vpop.f32.mrb[0].mxu0 }
 0x19e   :  { %125 = vst.msk [vmem:[#allocation2] sm:$0x1] %vm124_vm2, %v120_v17  ;;  %v340_v18 = vpop.f32.mrb[1].mxu0 }
 0x1a1   :  { %v208_v19 = vpop.f32.mrb[0].mxu1 }
 0x1a2   :  { %212 = vst.msk [vmem:[#allocation2 + $0x1] sm:$0x1] %vm124_vm2, %v208_v19  ;;  %v345_v20 = vpop.f32.mrb[1].mxu1  ;;  %vm309_vm2 = vcmp.eq.s32.totalorder %v489_v24, 3 }
 0x1a9   :  { %v213_v21 = vld [vmem:[#allocation2] sm:$0x3] }
 0x1aa   :  { %v217_v22 = vsel %vm216_vm3, %v213_v21, -inf }
 0x1ab   :  { %218 = vmax.xlane.f32.xlu1 %v217_v22 }
 0x238   :  { %v219_v25 = vpop.xlane.xlu1 %218 }
 0x239   :  { %vm220_vm4 = vcmp.eq.f32.partialorder %v213_v21, %v219_v25 }
 0x23a   :  { %v221_v26 = vsel %vm220_vm4, %v489_v24, 8 }
 0x23b   :  { %v222_v27 = vsel %vm216_vm3, %v221_v26, 2147483647 }
 0x23c   :  { %v224_v28 = vshra.s32 %v222_v27, 16  ;;  %v223_v30 = vand.u32 65535, %v222_v27 }
 0x23e   :  { %v226_v29 = vcvt.s32.f32 %v224_v28  ;;  %v225_v32 = vcvt.s32.f32 %v223_v30 }
 0x240   :  { %227 = vmin.xlane.f32.xlu1 %v226_v29 }
 0x2cd   :  { %v228_v31 = vpop.xlane.xlu1 %227 }
 0x2ce   :  { %vm229_vm5 = vcmp.eq.f32.partialorder %v226_v29, %v228_v31  ;;  %v234_v34 = vcvt.f32.s32 %v228_v31 }
 0x2cf   :  { %v230_v33 = vsel %vm229_vm5, %v225_v32, inf }
 0x2d0   :  { %231 = vmin.xlane.f32.xlu0 %v230_v33  ;;  %v235_v36 = vshll.u32 %v234_v34, 16 }
 0x35d   :  { %v232_v35 = vpop.xlane.xlu0 %231 }
 0x35e   :  { %v233_v37 = vcvt.f32.s32 %v232_v35 }
 0x360   :  { %v236_v38 = vadd.s32 %v235_v36, %v233_v37 }
 0x362   :  { %vm239_vm6 = vcmp.eq.s32.totalorder %v489_v24, %v236_v38  ;;  %v238_v55 = vsel %vm237_vm9, %v236_v38, 0 }
 0x363   :  { %v240_v39 = vsel %vm239_vm6, -inf, %v213_v21 }
 0x364   :  { %v241_v40 = vsel %vm216_vm3, %v240_v39, -inf }
 0x365   :  { %242 = vmax.xlane.f32.xlu1 %v241_v40 }
 0x3f2   :  { %v243_v41 = vpop.xlane.xlu1 %242 }
 0x3f3   :  { %vm244_vm7 = vcmp.eq.f32.partialorder %v240_v39, %v243_v41 }
 0x3f4   :  { %v245_v42 = vsel %vm244_vm7, %v489_v24, 8 }
 0x3f5   :  { %v246_v43 = vsel %vm216_vm3, %v245_v42, 2147483647 }
 0x3f6   :  { %v248_v44 = vshra.s32 %v246_v43, 16  ;;  %v247_v46 = vand.u32 65535, %v246_v43 }
 0x3f8   :  { %v250_v45 = vcvt.s32.f32 %v248_v44  ;;  %v249_v48 = vcvt.s32.f32 %v247_v46 }
 0x3fa   :  { %251 = vmin.xlane.f32.xlu0 %v250_v45 }
 0x487   :  { %v252_v47 = vpop.xlane.xlu0 %251 }
 0x488   :  { %vm253_vm8 = vcmp.eq.f32.partialorder %v250_v45, %v252_v47  ;;  %v258_v50 = vcvt.f32.s32 %v252_v47 }
 0x489   :  { %v254_v49 = vsel %vm253_vm8, %v249_v48, inf }
 0x48a   :  { %255 = vmin.xlane.f32.xlu1 %v254_v49  ;;  %v259_v52 = vshll.u32 %v258_v50, 16 }
 0x517   :  { %v256_v51 = vpop.xlane.xlu1 %255 }
 0x518   :  { %v257_v53 = vcvt.f32.s32 %v256_v51 }
 0x51a   :  { %v260_v54 = vadd.s32 %v259_v52, %v257_v53 }
 0x51c   :  { %v262_v56 = vsel %vm261_vm10, %v260_v54, %v238_v55  ;;  %vm263_vm11 = vcmp.eq.s32.totalorder %v489_v24, %v260_v54 }
 0x51d   :  { %v264_v57 = vsel %vm263_vm11, -inf, %v240_v39 }
 0x51e   :  { %v265_v58 = vsel %vm216_vm3, %v264_v57, -inf }
 0x51f   :  { %266 = vmax.xlane.f32.xlu0 %v265_v58 }
 0x5ac   :  { %v267_v59 = vpop.xlane.xlu0 %266 }
 0x5ad   :  { %vm268_vm12 = vcmp.eq.f32.partialorder %v264_v57, %v267_v59 }
 0x5ae   :  { %v269_v60 = vsel %vm268_vm12, %v489_v24, 8 }
 0x5af   :  { %v270_v61 = vsel %vm216_vm3, %v269_v60, 2147483647 }
 0x5b0   :  { %v272_v62 = vshra.s32 %v270_v61, 16  ;;  %v271_v0 = vand.u32 65535, %v270_v61 }
 0x5b2   :  { %v274_v63 = vcvt.s32.f32 %v272_v62  ;;  %v273_v2 = vcvt.s32.f32 %v271_v0 }
 0x5b4   :  { %275 = vmin.xlane.f32.xlu1 %v274_v63 }
 0x641   :  { %v276_v1 = vpop.xlane.xlu1 %275 }
 0x642   :  { %vm277_vm13 = vcmp.eq.f32.partialorder %v274_v63, %v276_v1  ;;  %v282_v4 = vcvt.f32.s32 %v276_v1 }
 0x643   :  { %v278_v3 = vsel %vm277_vm13, %v273_v2, inf }
 0x644   :  { %279 = vmin.xlane.f32.xlu0 %v278_v3  ;;  %v283_v6 = vshll.u32 %v282_v4, 16 }
 0x6d1   :  { %v280_v5 = vpop.xlane.xlu0 %279 }
 0x6d2   :  { %v281_v7 = vcvt.f32.s32 %v280_v5 }
 0x6d4   :  { %v284_v8 = vadd.s32 %v283_v6, %v281_v7 }
 0x6d6   :  { %vm287_vm15 = vcmp.eq.s32.totalorder %v489_v24, %v284_v8  ;;  %v286_v9 = vsel %vm285_vm14, %v284_v8, %v262_v56 }
 0x6d7   :  { %v288_v10 = vsel %vm287_vm15, -inf, %v264_v57 }
 0x6d8   :  { %v289_v11 = vsel %vm216_vm3, %v288_v10, -inf }
 0x6d9   :  { %290 = vmax.xlane.f32.xlu1 %v289_v11 }
 0x766   :  { %v291_v12 = vpop.xlane.xlu1 %290 }
 0x767   :  { %vm292_vm0 = vcmp.eq.f32.partialorder %v288_v10, %v291_v12 }
 0x768   :  { %v293_v13 = vsel %vm292_vm0, %v489_v24, 8 }
 0x769   :  { %v294_v14 = vsel %vm216_vm3, %v293_v13, 2147483647 }
 0x76a   :  { %v296_v15 = vshra.s32 %v294_v14, 16  ;;  %v295_v17 = vand.u32 65535, %v294_v14 }
 0x76c   :  { %v298_v16 = vcvt.s32.f32 %v296_v15  ;;  %v297_v19 = vcvt.s32.f32 %v295_v17 }
 0x76e   :  { %299 = vmin.xlane.f32.xlu0 %v298_v16 }
 0x7fb   :  { %v300_v18 = vpop.xlane.xlu0 %299 }
 0x7fc   :  { %vm301_vm1 = vcmp.eq.f32.partialorder %v298_v16, %v300_v18  ;;  %v306_v21 = vcvt.f32.s32 %v300_v18 }
 0x7fd   :  { %v302_v20 = vsel %vm301_vm1, %v297_v19, inf }
 0x7fe   :  { %303 = vmin.xlane.f32.xlu1 %v302_v20  ;;  %v307_v23 = vshll.u32 %v306_v21, 16 }
 0x88b   :  { %v304_v22 = vpop.xlane.xlu1 %303 }
 0x88c   :  { %v305_v25 = vcvt.f32.s32 %v304_v22 }
 0x88e   :  { %v308_v26 = vadd.s32 %v307_v23, %v305_v25 }
 0x890   :  { %v310_v27 = vsel %vm309_vm2, %v308_v26, %v286_v9 }
 0x891   :  { %311 = vst [vmem:[#allocation8] sm:$0x3] %v310_v27 }
 0x892   :  { %412 = shalt.err (!%p409_p6)
}
 0x893   :  { %s413_s10 = scalar_lea.hbm %s523_s2, 32 }
 0x894   :  { %p414_p7 = scmp.ne.s32.totalorder %s523_s2, %s413_s10  ;;  %p417_p8 = scmp.lt.u32.totalorder %s413_s10, %s523_s2 }
 0x896   :  { %p419_p9 = pnand %p417_p8, %p414_p7 }
 0x898   :  { %422 = shalt.err (!%p419_p9)
}
 0x899   :  { %321 = dma.vmem_to_hbm [thread:$0]  %s319_s6, 32, %s523_s2, [#allocation5]  }
 0x89a   :  { %427 = dma.done.wait [#allocation5], 32  }
 0x89b   :  { %428 = vsyncadd [#allocation5], 4294967264 }
 0x89c   :  { %325 = vsyncpa [#allocation4], 1 }
 0x89d   :  { %326 = vsyncpa [#allocation7], 1 }
 0x89e   :  { %327 = vsyncpa [#allocation5], 1 }

</bundles_post_ra>
